<compile_context>
chip_gen: v7x
topology: tpu7x:2x2x1
jax: 0.10.0
libtpu: 0.0.40
codegen_flags: <defaults>
</compile_context>

<pallas_src>
import functools

import jax
import jax.numpy as jnp
from jax.experimental import pallas as pl
from jax.experimental.pallas import tpu as pltpu


def _round_up(n: int, m: int) -> int:
    return ((n + m - 1) // m) * m


# -----------------------------------------------------------------------------
# Kernel body (shared by the no-grid tiny-batch path and the batch-tiled path).
# -----------------------------------------------------------------------------
def _mlp_kernel(x_ref, w1_ref, b1_ref, w2_ref, b2_ref, o_ref):
    # x_ref:  [tb, F]   (compute dtype: f32 or bf16)
    # w1_ref: [F, Hp]   w2_ref: [Hp, Op]   (compute dtype)
    # b1_ref: [1, Hp]   b2_ref: [1, Op]    (f32)
    # o_ref:  [tb, Op]  (f32)
    h = jnp.dot(x_ref[...], w1_ref[...], preferred_element_type=jnp.float32)
    # Bias + ReLU stay in f32 (v5e's VPU has no bf16 path; accumulator is f32).
    h = jnp.maximum(h + b1_ref[...], 0.0)
    # Cast back to the operand dtype only for the second MXU pass.
    h = h.astype(w2_ref.dtype)
    y = jnp.dot(h, w2_ref[...], preferred_element_type=jnp.float32)
    o_ref[...] = (y + b2_ref[...]).astype(o_ref.dtype)


# -----------------------------------------------------------------------------
# Parameter preparation: pad ONCE at init time, not per forward call.
# -----------------------------------------------------------------------------
def prepare_params(w1, b1, w2, b2, *, compute_dtype=jnp.float32):
    """Pad hidden/class dims to multiples of 128 (lane-dense, unmasked vst).

    Padding with zeros is exact: ReLU(0)=0 and zero weight rows contribute 0.
    Matmul operands stored in `compute_dtype` (bf16 at real sizes); biases stay
    f32 because bias+ReLU run in f32.
    """
    F, H = w1.shape
    O = w2.shape[1]
    Hp = _round_up(max(H, 128), 128)   # keep 128 multiples; do NOT round to 256
    Op = _round_up(max(O, 128), 128)

    w1_p = jnp.zeros((F, Hp), compute_dtype).at[:, :H].set(w1.astype(compute_dtype))
    b1_p = jnp.zeros((1, Hp), jnp.float32).at[0, :H].set(b1.astype(jnp.float32))
    w2_p = jnp.zeros((Hp, Op), compute_dtype).at[:H, :O].set(w2.astype(compute_dtype))
    b2_p = jnp.zeros((1, Op), jnp.float32).at[0, :O].set(b2.astype(jnp.float32))
    return {"w1": w1_p, "b1": b1_p, "w2": w2_p, "b2": b2_p}


# -----------------------------------------------------------------------------
# Forward pass.
# -----------------------------------------------------------------------------
@functools.partial(jax.jit, static_argnames=("num_classes", "batch_tile"))
def fully_connected_forward(x_nchw, params, *, num_classes, batch_tile=256):
    """x_nchw: [B, C, H, W]. Returns logits [B, num_classes] (float32)."""
    w1_p, b1_p, w2_p, b2_p = params["w1"], params["b1"], params["w2"], params["b2"]
    B = x_nchw.shape[0]
    F, Hp = w1_p.shape
    Op = w2_p.shape[1]

    # Flatten NCHW -> [B, F] (row-major; matches torch .view(B, -1)) and cast to
    # the matmul operand dtype.  No per-call batch/feature padding of x.
    x_flat = x_nchw.reshape(B, -1).astype(w1_p.dtype)
    assert x_flat.shape[1] == F, "flattened feature dim does not match w1"

    itemsize = jnp.dtype(w1_p.dtype).itemsize
    flops = 2 * B * F * Hp + 2 * B * Hp * Op
    bytes_accessed = itemsize * (B * F + F * Hp + Hp * Op) + 4 * (Hp + Op + B * Op)
    cost = pl.CostEstimate(flops=flops, transcendentals=0,
                           bytes_accessed=bytes_accessed)

    if B < batch_tile:
        # --- Tiny-batch path: one invocation, every operand a single
        # full-array VMEM block (no grid -> no per-step pipeline overhead, no
        # double-buffering of weights that are only fetched once).
        vmem = pl.BlockSpec(memory_space=pltpu.MemorySpace.VMEM)
        logits_p = pl.pallas_call(
            _mlp_kernel,
            out_shape=jax.ShapeDtypeStruct((B, Op), jnp.float32),
            in_specs=[vmem] * 5,
            out_specs=vmem,
            cost_estimate=cost,
        )(x_flat, w1_p, b1_p, w2_p, b2_p)
        return logits_p[:, :num_classes]

    # --- Batch-tiled path (real batch sizes): grid over batch tiles, weights
    # and biases VMEM-resident across steps (constant index_maps), batch axis
    # marked "parallel" so v7x's two TensorCores split it.
    tb = batch_tile
    Bp = _round_up(B, tb)
    if Bp != B:
        x_flat = jnp.pad(x_flat, ((0, Bp - B), (0, 0)))  # only for ragged batches

    # VMEM budget: (double-buffered) weights + biases + double-buffered x/out
    # tiles + f32 intermediates; capped below v7x's 64 MiB physical VMEM.
    needed = (
        2 * (F * Hp + Hp * Op) * itemsize
        + 2 * (Hp + Op) * 4
        + 2 * tb * F * itemsize
        + 2 * tb * Op * 4
        + tb * Hp * 4
        + tb * Op * 4
    )
    vmem_limit = int(min(max(needed * 3 // 2, 32 * 1024 * 1024), 56 * 1024 * 1024))

    logits_p = pl.pallas_call(
        _mlp_kernel,
        out_shape=jax.ShapeDtypeStruct((Bp, Op), jnp.float32),
        grid=(Bp // tb,),
        in_specs=[
            pl.BlockSpec((tb, F), lambda i: (i, 0)),    # x: tiled over batch
            pl.BlockSpec((F, Hp), lambda i: (0, 0)),    # w1: VMEM-resident
            pl.BlockSpec((1, Hp), lambda i: (0, 0)),    # b1: VMEM-resident
            pl.BlockSpec((Hp, Op), lambda i: (0, 0)),   # w2: VMEM-resident
            pl.BlockSpec((1, Op), lambda i: (0, 0)),    # b2: VMEM-resident
        ],
        out_specs=pl.BlockSpec((tb, Op), lambda i: (i, 0)),
        cost_estimate=cost,
        compiler_params=pltpu.CompilerParams(
            dimension_semantics=("parallel",),
            vmem_limit_bytes=vmem_limit,
        ),
    )(x_flat, w1_p, b1_p, w2_p, b2_p)
    # TODO(synk): at very large F*Hp, additionally set pipeline_mode=pl.Buffered(1)
    #             on the weight specs to drop the unused second weight buffer.
    return logits_p[:B, :num_classes]


# -----------------------------------------------------------------------------
# Pure-JAX reference (same dtype semantics as the kernel).
# -----------------------------------------------------------------------------
def _reference(x_nchw, w1, b1, w2, b2, compute_dtype=jnp.float32):
    B = x_nchw.shape[0]
    xf = x_nchw.reshape(B, -1).astype(compute_dtype)
    h = jnp.dot(xf, w1.astype(compute_dtype), preferred_element_type=jnp.float32)
    h = jnp.maximum(h + b1.astype(jnp.float32), 0.0)
    y = jnp.dot(h.astype(compute_dtype), w2.astype(compute_dtype),
                preferred_element_type=jnp.float32)
    return y + b2.astype(jnp.float32)


if __name__ == "__main__":
    key = jax.random.PRNGKey(0)
    kx, k1, k2, k3, k4, kx2 = jax.random.split(key, 6)

    # Shapes implied by a fully-connected image classifier:
    # 1x16x16 images -> 256 features, hidden 32, 10 classes.
    B, C, HH, WW = 2, 1, 16, 16
    FEAT, HID, OUT = C * HH * WW, 32, 10

    x = jax.random.normal(kx, (B, C, HH, WW), dtype=jnp.float32)
    w1 = jax.random.normal(k1, (FEAT, HID), dtype=jnp.float32) * 0.05
    b1 = jax.random.normal(k2, (HID,), dtype=jnp.float32) * 0.01
    w2 = jax.random.normal(k3, (HID, OUT), dtype=jnp.float32) * 0.05
    b2 = jax.random.normal(k4, (OUT,), dtype=jnp.float32) * 0.01

    # 1) Tiny-batch path: f32 operands, single full-array VMEM block, no grid.
    params_f32 = prepare_params(w1, b1, w2, b2, compute_dtype=jnp.float32)
    y_small = fully_connected_forward(x, params_f32, num_classes=OUT)
    y_small = jax.block_until_ready(y_small)
    y_small_ref = _reference(x, w1, b1, w2, b2, jnp.float32)
    assert y_small.shape == (B, OUT)
    assert jnp.allclose(y_small, y_small_ref, atol=1e-4, rtol=1e-4)

    # 2) Batch-tiled path: bf16 operands, grid over batch ("parallel"),
    #    weights VMEM-resident across steps.
    B2 = 256
    x_big = jax.random.normal(kx2, (B2, C, HH, WW), dtype=jnp.float32)
    params_bf16 = prepare_params(w1, b1, w2, b2, compute_dtype=jnp.bfloat16)
    y_big = fully_connected_forward(x_big, params_bf16, num_classes=OUT,
                                    batch_tile=128)
    y_big = jax.block_until_ready(y_big)
    y_big_ref = _reference(x_big, w1, b1, w2, b2, jnp.bfloat16)
    assert y_big.shape == (B2, OUT)
    assert jnp.allclose(y_big, y_big_ref, atol=2e-2, rtol=2e-2)

    print("KERNEL_OK")
</pallas_src>

<mosaic_0001>
module attributes {stable_mosaic.version = 11 : i64} {
  func.func @_mlp_kernel(%arg0: memref<2x256xf32, #tpu.memory_space<vmem>>, %arg1: memref<256x128xf32, #tpu.memory_space<vmem>>, %arg2: memref<1x128xf32, #tpu.memory_space<vmem>>, %arg3: memref<128x128xf32, #tpu.memory_space<vmem>>, %arg4: memref<1x128xf32, #tpu.memory_space<vmem>>, %arg5: memref<2x128xf32, #tpu.memory_space<vmem>>) attributes {dimension_semantics = [], scalar_prefetch = 0 : i64, scratch_operands = 0 : i64, tpu.core_type = #tpu.core_type<tc>} {
    %c0 = arith.constant 0 : index
    %c0_0 = arith.constant 0 : index
    %0 = vector.load %arg0[%c0, %c0_0] : memref<2x256xf32, #tpu.memory_space<vmem>>, vector<2x256xf32>
    %c0_1 = arith.constant 0 : index
    %c0_2 = arith.constant 0 : index
    %1 = vector.load %arg1[%c0_1, %c0_2] : memref<256x128xf32, #tpu.memory_space<vmem>>, vector<256x128xf32>
    %cst = arith.constant dense<0.000000e+00> : vector<2x128xf32>
    %2 = tpu.matmul %0, %1, %cst {dimension_numbers = #tpu.dot_dimension_numbers<[1], [0], [0], [1], [0, 0, 1, 1], [], []>} : vector<2x256xf32>, vector<256x128xf32>, vector<2x128xf32> -> vector<2x128xf32>
    %c0_3 = arith.constant 0 : index
    %c0_4 = arith.constant 0 : index
    %3 = vector.load %arg2[%c0_3, %c0_4] : memref<1x128xf32, #tpu.memory_space<vmem>>, vector<1x128xf32>
    %4 = vector.broadcast %3 : vector<1x128xf32> to vector<2x128xf32>
    %5 = arith.addf %2, %4 : vector<2x128xf32>
    %cst_5 = arith.constant 0.000000e+00 : f32
    %6 = vector.broadcast %cst_5 : f32 to vector<2x128xf32>
    %7 = arith.maximumf %5, %6 : vector<2x128xf32>
    %c0_6 = arith.constant 0 : index
    %c0_7 = arith.constant 0 : index
    %8 = vector.load %arg3[%c0_6, %c0_7] : memref<128x128xf32, #tpu.memory_space<vmem>>, vector<128x128xf32>
    %cst_8 = arith.constant dense<0.000000e+00> : vector<2x128xf32>
    %9 = tpu.matmul %7, %8, %cst_8 {dimension_numbers = #tpu.dot_dimension_numbers<[1], [0], [0], [1], [0, 0, 1, 1], [], []>} : vector<2x128xf32>, vector<128x128xf32>, vector<2x128xf32> -> vector<2x128xf32>
    %c0_9 = arith.constant 0 : index
    %c0_10 = arith.constant 0 : index
    %10 = vector.load %arg4[%c0_9, %c0_10] : memref<1x128xf32, #tpu.memory_space<vmem>>, vector<1x128xf32>
    %11 = vector.broadcast %10 : vector<1x128xf32> to vector<2x128xf32>
    %12 = arith.addf %9, %11 : vector<2x128xf32>
    %c0_11 = arith.constant 0 : index
    %c0_12 = arith.constant 0 : index
    %13 = vector.load %arg5[%c0_11, %c0_12] : memref<2x128xf32, #tpu.memory_space<vmem>>, vector<2x128xf32>
    tpu.vector_store %arg5[%c0_11, %c0_12], %12 {strides = array<i32>} : memref<2x128xf32, #tpu.memory_space<vmem>>, vector<2x128xf32>,
    return
  }
}

</mosaic_0001>

<bundles_post_ra>
// kernel: fully_connected_forward.1
= control target key start
LH: loop header
LB: loop body
LE: loop exit
PB: predicated region body
PF: predicated region fallthrough
CT: control target
= control target key end

     0   :  { %10 = vsyncpa [#allocation3], 0  ;;  %s603_s0 = inlined_call_operand.vmem [shape: f32[2,256], index: 0, kind: input, shape index: {}]   ;;  %s604_s1 = inlined_call_operand.hbm [shape: f32[256,128], index: 1, kind: input, shape index: {}]   ;;  %s605_s2 = inlined_call_operand.vmem [shape: f32[1,128], index: 2, kind: input, shape index: {}]   ;;  %s606_s3 = inlined_call_operand.hbm [shape: f32[128,128], index: 3, kind: input, shape index: {}]   ;;  %s607_s4 = inlined_call_operand.vmem [shape: f32[1,128], index: 4, kind: input, shape index: {}]   ;;  %s608_s5 = inlined_call_operand.hbm [shape: f32[2,128], index: 5, kind: output, shape index: {}]  }
   0x1   :  { %11 = vsyncpa [#allocation6], 0 }
   0x2   :  { %12 = vsyncpa [#allocation4], 0  ;;  %s507_s18 = smov [#allocation2]   ;;  %s435_s22 = scalar_lea.hbm %s604_s1, 4096 }
   0x3   :  { %s20_s19 = sshll.u32 %s507_s18, 4  ;;  %p436_p0 = scmp.ne.s32.totalorder %s604_s1, %s435_s22  ;;  %s21_s19 = int_to_ptr.vmem [resolvable:$true] %s20_s19 }
   0x4   :  { %p439_p1 = scmp.lt.u32.totalorder %s435_s22, %s604_s1 }
   0x6   :  { %p441_p2 = pnand %p439_p1, %p436_p0 }
   0x8   :  { %444 = shalt.err (!%p441_p2)
}
   0x9   :  { %s445_s27 = scalar_lea.vmem %s21_s19, 4096  ;;  %p450_p4 = scmp.lt.s32.totalorder %s21_s19, %s21_s19 }
   0xa   :  { %p446_p3 = scmp.ne.s32.totalorder %s21_s19, %s445_s27  ;;  %p451_p5 = scmp.lt.s32.totalorder %s445_s27, %s445_s27 }
   0xc   :  { %p452_p6 = por %p451_p5, %p450_p4 }
   0xe   :  { %p453_p7 = pnand %p452_p6, %p446_p3 }
  0x10   :  { %456 = shalt.err (!%p453_p7)
}
  0x11   :  { %s508_s28 = smov 128   ;;  %s509_s29 = smov 8  }
  0x12   :  { %26 = dma.hbm_to_vmem [thread:$0]  %s604_s1, 4096, %s21_s19, [#allocation3], %s508_s28, %s508_s28, %s509_s29  }
  0x13   :  { %s510_s7 = smov [#allocation5]   ;;  %s457_s11 = scalar_lea.hbm %s606_s3, 2048 }
  0x14   :  { %s34_s8 = sshll.u32 %s510_s7, 4  ;;  %p458_p8 = scmp.ne.s32.totalorder %s606_s3, %s457_s11  ;;  %s35_s8 = int_to_ptr.vmem [resolvable:$true] %s34_s8 }
  0x15   :  { %p461_p9 = scmp.lt.u32.totalorder %s457_s11, %s606_s3 }
  0x17   :  { %p463_p10 = pnand %p461_p9, %p458_p8 }
  0x19   :  { %466 = shalt.err (!%p463_p10)
}
  0x1a   :  { %s467_s16 = scalar_lea.vmem %s35_s8, 2048  ;;  %p472_p12 = scmp.lt.s32.totalorder %s35_s8, %s35_s8 }
  0x1b   :  { %p468_p11 = scmp.ne.s32.totalorder %s35_s8, %s467_s16  ;;  %p473_p13 = scmp.lt.s32.totalorder %s467_s16, %s467_s16 }
  0x1d   :  { %p474_p0 = por %p473_p13, %p472_p12 }
  0x1f   :  { %p475_p1 = pnand %p474_p0, %p468_p11 }
  0x21   :  { %478 = shalt.err (!%p475_p1)
}
  0x22   :  { %40 = dma.hbm_to_vmem [thread:$0]  %s606_s3, 2048, %s35_s8, [#allocation6], %s508_s28, %s508_s28, %s509_s29  }
  0x23   :  { %501 = dma.done.wait [#allocation3], 4096  }
  0x24   :  { %502 = vsyncadd [#allocation3], 4294963200 }
  0x25   :  { %503 = dma.done.wait [#allocation6], 2048  }
  0x26   :  { %504 = vsyncadd [#allocation6], 4294965248  ;;  %v511_v0 = vmov 0.0|0.0   ;;  %v66_v1 = vld [vmem:[#allocation2 + $0x80] sm:$0xff]  ;;  %v67_v2 = vld [vmem:[#allocation2 + $0x88] sm:$0xff]  ;;  %vm512_vm0 = vmmov 0  }
  0x27   :  { %403 = vmatprep.subr.bf16.mxu1 %v511_v0  ;;  %v50_v3 = vld [vmem:[#allocation2] sm:$0xff]  ;;  %v371_v4 = vpack.c.bf16 %v67_v2, %v66_v1  ;;  %v51_v5 = vld [vmem:[#allocation2 + $0x8] sm:$0xff]  ;;  %v68_v6 = vld [vmem:[#allocation2 + $0x90] sm:$0xff]  ;;  %s514_s22 = smov [#allocation7]  }
  0x28   :  { %v69_v7 = vld [vmem:[#allocation2 + $0x98] sm:$0xff]  ;;  %v373_v8 = vpack.c.bf16 %v51_v5, %v50_v3  ;;  %v52_v10 = vld [vmem:[#allocation2 + $0x10] sm:$0xff]  ;;  %v70_v12 = vld [vmem:[#allocation2 + $0xa0] sm:$0xff]  ;;  %s271_s23 = sshll.u32 %s514_s22, 4  ;;  %s272_s23 = int_to_ptr.vmem [resolvable:$true] %s271_s23 }
  0x29   :  { %v375_v9 = vpack.c.bf16 %v69_v7, %v68_v6  ;;  %v53_v11 = vld [vmem:[#allocation2 + $0x18] sm:$0xff]  ;;  %372 = vmatprep.subr.bf16.mxu0 %v371_v4  ;;  %v71_v13 = vld [vmem:[#allocation2 + $0xa8] sm:$0xff]  ;;  %v54_v16 = vld [vmem:[#allocation2 + $0x20] sm:$0xff]  ;;  %s479_s24 = scalar_lea.vmem %s272_s23, 32  ;;  %p484_p3 = scmp.lt.s32.totalorder %s272_s23, %s272_s23 }
  0x2a   :  { %374 = vmatpush3.bf16.msra.mxu0 %v373_v8  ;;  %v377_v14 = vpack.c.bf16 %v53_v11, %v52_v10  ;;  %v379_v15 = vpack.c.bf16 %v71_v13, %v70_v12  ;;  %v55_v17 = vld [vmem:[#allocation2 + $0x28] sm:$0xff]  ;;  %v72_v18 = vld [vmem:[#allocation2 + $0xb0] sm:$0xff]  ;;  %v73_v19 = vld [vmem:[#allocation2 + $0xb8] sm:$0xff]  ;;  %v513_v12 = vmov 0.0   ;;  %p480_p2 = scmp.ne.s32.totalorder %s272_s23, %s479_s24  ;;  %p485_p4 = scmp.lt.s32.totalorder %s479_s24, %s479_s24 }
  0x2b   :  { %376 = vmatprep.subr.bf16.mxu0 %v375_v9  ;;  %v381_v20 = vpack.c.bf16 %v55_v17, %v54_v16  ;;  %v383_v21 = vpack.c.bf16 %v73_v19, %v72_v18  ;;  %v56_v22 = vld [vmem:[#allocation2 + $0x30] sm:$0xff]  ;;  %v57_v23 = vld [vmem:[#allocation2 + $0x38] sm:$0xff]  ;;  %v74_v24 = vld [vmem:[#allocation2 + $0xc0] sm:$0xff]  ;;  %368 = vmatprep.mubr.msk.f32.mxu1 %vm512_vm0, %v513_v12 }
  0x2c   :  { %v75_v25 = vld [vmem:[#allocation2 + $0xc8] sm:$0xff]  ;;  %v573_v26 = vld.sshfl [vmem:[%s603_s0] sm:$0x33 pattern:$0x76325410]  ;;  %v173_v30 = vld [vmem:[#allocation5 + $0x10] sm:$0xff]  ;;  %v385_v31 = vpack.c.bf16 %v57_v23, %v56_v22  ;;  %p486_p5 = por %p485_p4, %p484_p3 }
  0x2d   :  { %v97_v27 = vcombine.high %v573_v26, %v573_v26  ;;  %v171_v28 = vld [vmem:[#allocation5] sm:$0xff]  ;;  %v172_v29 = vld [vmem:[#allocation5 + $0x8] sm:$0xff]  ;;  %v174_v33 = vld [vmem:[#allocation5 + $0x18] sm:$0xff]  ;;  %v387_v34 = vpack.c.bf16 %v75_v25, %v74_v24 }
  0x2e   :  { %378 = vmatpush3.bf16.msra.mxu0 %v377_v14  ;;  %v404_v32 = vpack.c.bf16 %v172_v29, %v171_v28  ;;  %v58_v35 = vld [vmem:[#allocation2 + $0x40] sm:$0xff]  ;;  %v59_v36 = vld [vmem:[#allocation2 + $0x48] sm:$0xff]  ;;  %v76_v37 = vld [vmem:[#allocation2 + $0xd0] sm:$0xff]  ;;  %v407_v39 = vpack.c.bf16 %v174_v33, %v173_v30  ;;  %p487_p6 = pnand %p486_p5, %p480_p2 }
  0x2f   :  { %380 = vmatprep.subr.bf16.mxu0 %v379_v15  ;;  %164 = vmatprep.mubr.f32.mxu0 %v97_v27  ;;  %v77_v38 = vld [vmem:[#allocation2 + $0xd8] sm:$0xff]  ;;  %v175_v40 = vld [vmem:[#allocation5 + $0x20] sm:$0xff]  ;;  %v176_v41 = vld [vmem:[#allocation5 + $0x28] sm:$0xff]  ;;  %v389_v42 = vpack.c.bf16 %v59_v36, %v58_v35 }
  0x30   :  { %405 = vmatpush3.bf16.msra.mxu1 %v404_v32  ;;  %v391_v43 = vpack.c.bf16 %v77_v38, %v76_v37  ;;  %v60_v44 = vld [vmem:[#allocation2 + $0x50] sm:$0xff]  ;;  %v61_v45 = vld [vmem:[#allocation2 + $0x58] sm:$0xff]  ;;  %v78_v46 = vld [vmem:[#allocation2 + $0xe0] sm:$0xff]  ;;  %v410_v48 = vpack.c.bf16 %v176_v41, %v175_v40 }
  0x31   :  { %406 = vmatprep.subr.bf16.mxu1 %v511_v0  ;;  %v79_v47 = vld [vmem:[#allocation2 + $0xe8] sm:$0xff]  ;;  %v177_v49 = vld [vmem:[#allocation5 + $0x30] sm:$0xff]  ;;  %v178_v50 = vld [vmem:[#allocation5 + $0x38] sm:$0xff]  ;;  %v393_v51 = vpack.c.bf16 %v61_v45, %v60_v44 }
  0x32   :  { %382 = vmatpush3.bf16.msra.mxu0 %v381_v20  ;;  %v395_v52 = vpack.c.bf16 %v79_v47, %v78_v46  ;;  %v62_v53 = vld [vmem:[#allocation2 + $0x60] sm:$0xff]  ;;  %v63_v54 = vld [vmem:[#allocation2 + $0x68] sm:$0xff]  ;;  %v80_v55 = vld [vmem:[#allocation2 + $0xf0] sm:$0xff]  ;;  %v413_v57 = vpack.c.bf16 %v178_v50, %v177_v49 }
  0x33   :  { %384 = vmatprep.subr.bf16.mxu0 %v383_v21  ;;  %v81_v56 = vld [vmem:[#allocation2 + $0xf8] sm:$0xff]  ;;  %v179_v58 = vld [vmem:[#allocation5 + $0x40] sm:$0xff]  ;;  %v180_v59 = vld [vmem:[#allocation5 + $0x48] sm:$0xff]  ;;  %v397_v60 = vpack.c.bf16 %v63_v54, %v62_v53 }
  0x34   :  { %408 = vmatpush3.bf16.msra.mxu1 %v407_v39  ;;  %v399_v61 = vpack.c.bf16 %v81_v56, %v80_v55  ;;  %v64_v62 = vld [vmem:[#allocation2 + $0x70] sm:$0xff]  ;;  %v65_v63 = vld [vmem:[#allocation2 + $0x78] sm:$0xff]  ;;  %v416_v1 = vpack.c.bf16 %v180_v59, %v179_v58  ;;  %v183_v6 = vld [vmem:[#allocation5 + $0x60] sm:$0xff] }
  0x35   :  { %409 = vmatprep.subr.bf16.mxu1 %v511_v0  ;;  %v181_v2 = vld [vmem:[#allocation5 + $0x50] sm:$0xff]  ;;  %v182_v3 = vld [vmem:[#allocation5 + $0x58] sm:$0xff]  ;;  %v401_v4 = vpack.c.bf16 %v65_v63, %v64_v62  ;;  %v184_v7 = vld [vmem:[#allocation5 + $0x68] sm:$0xff] }
  0x36   :  { %386 = vmatpush3.bf16.msra.mxu0 %v385_v31  ;;  %v419_v5 = vpack.c.bf16 %v182_v3, %v181_v2  ;;  %v422_v8 = vpack.c.bf16 %v184_v7, %v183_v6  ;;  %v185_v9 = vld [vmem:[#allocation5 + $0x70] sm:$0xff]  ;;  %v186_v10 = vld [vmem:[#allocation5 + $0x78] sm:$0xff]  ;;  %v281_v14 = vld [vmem:[%s605_s2] ss:$0 sm:$0xff] }
  0x37   :  { %388 = vmatprep.subr.bf16.mxu0 %v387_v34  ;;  %v425_v11 = vpack.c.bf16 %v186_v10, %v185_v9 }
  0x38   :  { %411 = vmatpush3.bf16.msra.mxu1 %v410_v48 }
  0x39   :  { %412 = vmatprep.subr.bf16.mxu1 %v511_v0 }
  0x3a   :  { %390 = vmatpush3.bf16.msra.mxu0 %v389_v42 }
  0x3b   :  { %392 = vmatprep.subr.bf16.mxu0 %v391_v43 }
  0x3c   :  { %414 = vmatpush3.bf16.msra.mxu1 %v413_v57 }
  0x3d   :  { %415 = vmatprep.subr.bf16.mxu1 %v511_v0 }
  0x3e   :  { %394 = vmatpush3.bf16.msra.mxu0 %v393_v51 }
  0x3f   :  { %396 = vmatprep.subr.bf16.mxu0 %v395_v52 }
  0x40   :  { %417 = vmatpush3.bf16.msra.mxu1 %v416_v1 }
  0x41   :  { %418 = vmatprep.subr.bf16.mxu1 %v511_v0 }
  0x42   :  { %398 = vmatpush3.bf16.msra.mxu0 %v397_v60 }
  0x43   :  { %400 = vmatprep.subr.bf16.mxu0 %v399_v61 }
  0x44   :  { %420 = vmatpush3.bf16.msra.mxu1 %v419_v5 }
  0x45   :  { %421 = vmatprep.subr.bf16.mxu1 %v511_v0 }
  0x46   :  { %402 = vmatpush3.bf16.msra.mxu0 %v401_v4 }
  0x48   :  { %423 = vmatpush3.bf16.msra.mxu1 %v422_v8 }
  0x49   :  { %165 = vmatmul.mubr.f32.vlgmr.msra.gmra.mrb[0].mxu0 %v573_v26  ;;  %424 = vmatprep.subr.bf16.mxu1 %v511_v0  ;;  %v283_v0 = vld [vmem:[%s607_s4] ss:$0 sm:$0xff] }
  0x4c   :  { %426 = vmatpush3.bf16.msra.mxu1 %v425_v11 }
 0x11c   :  { %v316_v13 = vpop.f32.mrb[0].mxu0 }
 0x11d   :  { %v317_v15 = vpop.f32.mrb[1].mxu0 }
 0x11e   :  { %v318_v16 = vadd.f32 %v317_v15, %v316_v13 }
 0x120   :  { %v167_v17 = vadd.f32 %v318_v16, %v281_v14 }
 0x122   :  { %v170_v18 = vmax.f32 %v167_v17, 0.0 }
 0x124   :  { %369 = vmatmul.mubr.f32.vlgmr.msra.gmra.mrb[0].mxu1 %v170_v18 }
 0x1f7   :  { %v260_v19 = vpop.f32.mrb[0].mxu1 }
 0x1f8   :  { %v261_v20 = vadd.f32 %v283_v0, %v260_v19  ;;  %v370_v21 = vpop.f32.mrb[1].mxu1 }
 0x1fa   :  { %264 = vst [vmem:[#allocation7] sm:$0x3] %v261_v20 }
 0x1fb   :  { %490 = shalt.err (!%p487_p6)
}
 0x1fc   :  { %s491_s26 = scalar_lea.hbm %s608_s5, 32 }
 0x1fd   :  { %p492_p7 = scmp.ne.s32.totalorder %s608_s5, %s491_s26  ;;  %p495_p8 = scmp.lt.u32.totalorder %s491_s26, %s608_s5 }
 0x1ff   :  { %p497_p9 = pnand %p495_p8, %p492_p7 }
 0x201   :  { %500 = shalt.err (!%p497_p9)
}
 0x202   :  { %274 = dma.vmem_to_hbm [thread:$0]  %s272_s23, 32, %s608_s5, [#allocation4]  }
 0x203   :  { %505 = dma.done.wait [#allocation4], 32  }
 0x204   :  { %506 = vsyncadd [#allocation4], 4294967264 }
 0x205   :  { %278 = vsyncpa [#allocation3], 1 }
 0x206   :  { %279 = vsyncpa [#allocation6], 1 }
 0x207   :  { %280 = vsyncpa [#allocation4], 1 }

</bundles_post_ra>
